<compile_context>
chip_gen: v7x
topology: tpu7x:2x2x1
jax: 0.10.0
libtpu: 0.0.40
codegen_flags: <defaults>
</compile_context>

<pallas_src>
import functools

import jax
import jax.numpy as jnp
from jax.experimental import pallas as pl
from jax.experimental.pallas import tpu as pltpu


def _round_up(x, m):
    return ((x + m - 1) // m) * m


# Physical VMEM capacity (per TensorCore) for generation-aware limits.
try:
    _VMEM_CAP = int(pltpu.get_tpu_info().vmem_capacity_bytes)
except Exception:  # pragma: no cover - fall back to the smallest (v7x) VMEM.
    _VMEM_CAP = 64 << 20


# ----------------------------- kernels --------------------------------------
def _linear_kernel_single(x_ref, w_ref, b_ref, o_ref, *, compute_dtype):
    # Single K step: fuse matmul (MXU, f32 acc) + bias add + store.
    acc = jnp.dot(
        x_ref[...].astype(compute_dtype),
        w_ref[...].astype(compute_dtype),
        preferred_element_type=jnp.float32,
    )
    o_ref[...] = (acc + b_ref[...].astype(jnp.float32)).astype(o_ref.dtype)


def _linear_kernel_tiled(x_ref, w_ref, b_ref, o_ref, acc_ref, *, compute_dtype):
    k = pl.program_id(2)

    @pl.when(k == 0)
    def _init():
        acc_ref[...] = jnp.zeros_like(acc_ref)

    acc_ref[...] += jnp.dot(
        x_ref[...].astype(compute_dtype),
        w_ref[...].astype(compute_dtype),
        preferred_element_type=jnp.float32,
    )

    # Bias add / cast / store only once per output tile, on the last K step.
    @pl.when(k == pl.num_programs(2) - 1)
    def _finalize():
        o_ref[...] = (acc_ref[...] + b_ref[...].astype(jnp.float32)).astype(
            o_ref.dtype
        )


# ------------------------- tile selection -----------------------------------
def _select_tiles(Bp, Kp, Np):
    """Pick (tm, tn, tk) given sublane-aligned Bp and 128-aligned Kp, Np."""
    # --- M tile: avoid inflating the batch to a tile multiple.
    if Bp <= 512:
        tm = Bp  # resident-activation schedule: single M tile, W streamed once.
    else:
        candidates = (512, 448, 384, 320, 256, 192, 128)
        tm = min(candidates, key=lambda c: (_round_up(Bp, c) - Bp, -c))
    m_tiles = _round_up(Bp, tm) // tm

    # --- N tile: largest 128-multiple divisor of Np (lane-dense stores).
    tn = 128
    for c in (512, 384, 256, 128):
        if c <= Np and Np % c == 0:
            tn = c
            break
    if Np < 128:
        tn = Np  # (never happens: Np is padded to >= 128)
    # v7x megacore: with a single M tile, keep >= 2 parallel N tiles.
    if m_tiles == 1 and Np // tn < 2:
        for c in (256, 128):
            if c <= Np // 2 and Np % c == 0:
                tn = c
                break

    # --- K tile: single reduction step when small, else a divisor of Kp.
    if Kp <= 2048:
        tk = Kp
    else:
        tk = 128
        for c in (1024, 512, 384, 256, 128):
            if Kp % c == 0:
                tk = c
                break
    return tm, tn, tk


# ------------------------------ forward -------------------------------------
@functools.partial(jax.jit, static_argnames=("cout", "use_bf16"))
def linear_forward(x, w_padded, b_padded, *, cout, use_bf16=False):
    """x: (B, Cin); w_padded: (Kp, Np); b_padded: (1, Np); returns (B, cout).

    w_padded / b_padded come from init_linear_params (padded once, at init).
    """
    B, Cin = x.shape
    Kp, Np = w_padded.shape
    out_dtype = x.dtype
    itemsize = jnp.dtype(x.dtype).itemsize

    Bp = _round_up(B, 8)  # sublane alignment only; no tile-multiple inflation.
    tm, tn, tk = _select_tiles(Bp, Kp, Np)
    Bp_final = _round_up(Bp, tm)
    m_tiles = Bp_final // tm
    n_tiles = Np // tn
    k_tiles = Kp // tk

    # Only the activation is padded per call (K pad rows of W are zero, so the
    # zero-padded x columns contribute nothing to the dot product).
    xp = jnp.pad(x, ((0, Bp_final - B), (0, Kp - Cin)))

    compute_dtype = jnp.bfloat16 if use_bf16 else x.dtype

    # ---- VMEM budget: double-buffered operands + f32 accumulator ------------
    tile_bytes = (
        2 * tm * tk * itemsize      # x double buffer
        + 2 * tk * tn * itemsize    # w double buffer
        + 2 * tn * itemsize         # bias double buffer
        + 2 * tm * tn * itemsize    # output double buffer
        + (tm * tn * 4 if k_tiles > 1 else 0)  # f32 accumulator scratch
    )
    vmem_limit = int(
        min(max(tile_bytes + (8 << 20), 32 << 20), int(_VMEM_CAP * 0.85))
    )

    # Truthful cost estimate: W is read once per M tile, x once per N tile.
    cost = pl.CostEstimate(
        flops=2 * B * Cin * cout,
        transcendentals=0,
        bytes_accessed=int(
            itemsize
            * (Bp_final * Kp * n_tiles + Kp * Np * m_tiles + Np * m_tiles)
            + jnp.dtype(out_dtype).itemsize * Bp_final * Np
        ),
    )

    if k_tiles == 1:
        # Single-reduction-step fast path: no scratch accumulator needed.
        grid = (m_tiles, n_tiles)
        kernel = functools.partial(
            _linear_kernel_single, compute_dtype=compute_dtype
        )
        in_specs = [
            pl.BlockSpec((tm, tk), lambda i, j: (i, 0)),
            pl.BlockSpec((tk, tn), lambda i, j: (0, j)),
            pl.BlockSpec((1, tn), lambda i, j: (0, j)),
        ]
        out_spec = pl.BlockSpec((tm, tn), lambda i, j: (i, j))
        scratch = []
        dims = ("parallel", "parallel")
    else:
        grid = (m_tiles, n_tiles, k_tiles)
        kernel = functools.partial(
            _linear_kernel_tiled, compute_dtype=compute_dtype
        )
        in_specs = [
            pl.BlockSpec((tm, tk), lambda i, j, k: (i, k)),
            # TODO(synk): on v5e (lowest HBM BW) sweep pipeline_mode=pl.Buffered(3)
            # on this streamed-W spec if the per-step DMA is exposed.
            pl.BlockSpec((tk, tn), lambda i, j, k: (k, j)),
            pl.BlockSpec((1, tn), lambda i, j, k: (0, j)),
        ]
        out_spec = pl.BlockSpec((tm, tn), lambda i, j, k: (i, j))
        scratch = [pltpu.VMEM((tm, tn), jnp.float32)]
        dims = ("parallel", "parallel", "arbitrary")

    out_padded = pl.pallas_call(
        kernel,
        out_shape=jax.ShapeDtypeStruct((Bp_final, Np), out_dtype),
        grid_spec=pltpu.PrefetchScalarGridSpec(
            num_scalar_prefetch=0,
            grid=grid,
            in_specs=in_specs,
            out_specs=out_spec,
            scratch_shapes=scratch,
        ),
        compiler_params=pltpu.CompilerParams(
            dimension_semantics=dims,
            vmem_limit_bytes=vmem_limit,
        ),
        cost_estimate=cost,
    )(xp, w_padded, b_padded)

    return out_padded[:B, :cout]


# ------------------------------ params --------------------------------------
def init_linear_params(key, input_channels, output_channels, dtype=jnp.float32):
    """torch.nn.Linear-style init (uniform +/- 1/sqrt(in)); pads W/b ONCE here.

    Returns (w_padded, b_padded) where w_padded is (Kp, Np) = (round_up(in,128),
    round_up(out,128)) storing W^T zero-padded, and b_padded is (1, Np).
    """
    k_w, k_b = jax.random.split(key)
    bound = 1.0 / (input_channels ** 0.5)
    # PyTorch stores weight as (out, in); we keep the transposed (in, out) copy.
    w = jax.random.uniform(
        k_w, (output_channels, input_channels), dtype, minval=-bound, maxval=bound
    )
    b = jax.random.uniform(
        k_b, (output_channels,), dtype, minval=-bound, maxval=bound
    )
    w_t = w.T
    Kp = _round_up(input_channels, 128)
    Np = _round_up(output_channels, 128)
    w_padded = jnp.pad(
        w_t, ((0, Kp - input_channels), (0, Np - output_channels))
    )
    b_padded = jnp.pad(
        b.reshape(1, output_channels), ((0, 0), (0, Np - output_channels))
    )
    return w_padded, b_padded, w_t, b


# TODO(synk): fit()/eval() (Adam training loop + MSE loss) are host-side training
# utilities, not part of the forward pass, and are not implemented as kernels.

if __name__ == "__main__":
    key = jax.random.PRNGKey(0)
    k_p1, k_x1, k_p2, k_x2 = jax.random.split(key, 4)

    # --- Small shapes consistent with the module's forward: x is (batch, in). -
    batch, cin, cout = 8, 32, 16
    wp1, bp1, w1_t, b1 = init_linear_params(k_p1, cin, cout)
    x1 = jax.random.normal(k_x1, (batch, cin), jnp.float32)
    out1 = jax.block_until_ready(linear_forward(x1, wp1, bp1, cout=cout))
    ref1 = x1 @ w1_t + b1.reshape(1, -1)
    assert out1.shape == (batch, cout)
    assert jnp.allclose(out1, ref1, atol=1e-5, rtol=1e-5)

    # --- Unaligned shapes: adaptive tm (Bp=304), multi-K accumulation, padding.
    B2, Cin2, Cout2 = 300, 2500, 384
    wp2, bp2, w2_t, b2 = init_linear_params(k_p2, Cin2, Cout2)
    x2 = jax.random.normal(k_x2, (B2, Cin2), jnp.float32)
    out2 = jax.block_until_ready(linear_forward(x2, wp2, bp2, cout=Cout2))
    ref2 = jnp.dot(x2, w2_t, precision=jax.lax.Precision.HIGHEST) + b2.reshape(1, -1)
    assert out2.shape == (B2, Cout2)
    assert jnp.allclose(out2, ref2, atol=2e-3, rtol=2e-3)

    print("KERNEL_OK")
</pallas_src>

<mosaic_0001>
module attributes {stable_mosaic.version = 11 : i64} {
  func.func @_linear_kernel_single(%arg0: i32, %arg1: i32, %arg2: memref<8x128xf32, #tpu.memory_space<vmem>>, %arg3: memref<128x128xf32, #tpu.memory_space<vmem>>, %arg4: memref<1x128xf32, #tpu.memory_space<vmem>>, %arg5: memref<8x128xf32, #tpu.memory_space<vmem>>) attributes {dimension_semantics = [#tpu.dimension_semantics<parallel>, #tpu.dimension_semantics<parallel>], iteration_bounds = array<i64: 1, 1>, scalar_prefetch = 0 : i64, scratch_operands = 0 : i64, tpu.core_type = #tpu.core_type<tc>, window_params = [{transform_indices = @transform_0, window_bounds = array<i64: 8, 128>}, {transform_indices = @transform_1, window_bounds = array<i64: 128, 128>}, {transform_indices = @transform_2, window_bounds = array<i64: 1, 128>}, {transform_indices = @transform_3, window_bounds = array<i64: 8, 128>}]} {
    %c0 = arith.constant 0 : index
    %c0_0 = arith.constant 0 : index
    %0 = vector.load %arg2[%c0, %c0_0] : memref<8x128xf32, #tpu.memory_space<vmem>>, vector<8x128xf32>
    %c0_1 = arith.constant 0 : index
    %c0_2 = arith.constant 0 : index
    %1 = vector.load %arg3[%c0_1, %c0_2] : memref<128x128xf32, #tpu.memory_space<vmem>>, vector<128x128xf32>
    %cst = arith.constant dense<0.000000e+00> : vector<8x128xf32>
    %2 = tpu.matmul %0, %1, %cst {dimension_numbers = #tpu.dot_dimension_numbers<[1], [0], [0], [1], [0, 0, 1, 1], [], []>} : vector<8x128xf32>, vector<128x128xf32>, vector<8x128xf32> -> vector<8x128xf32>
    %c0_3 = arith.constant 0 : index
    %c0_4 = arith.constant 0 : index
    %3 = vector.load %arg4[%c0_3, %c0_4] : memref<1x128xf32, #tpu.memory_space<vmem>>, vector<1x128xf32>
    %4 = vector.broadcast %3 : vector<1x128xf32> to vector<8x128xf32>
    %5 = arith.addf %2, %4 : vector<8x128xf32>
    %c0_5 = arith.constant 0 : index
    %c0_6 = arith.constant 0 : index
    %6 = vector.load %arg5[%c0_5, %c0_6] : memref<8x128xf32, #tpu.memory_space<vmem>>, vector<8x128xf32>
    tpu.vector_store %arg5[%c0_5, %c0_6], %5 {strides = array<i32>} : memref<8x128xf32, #tpu.memory_space<vmem>>, vector<8x128xf32>,
    return
  }
  func.func @transform_0(%arg0: i32, %arg1: i32) -> (i32, i32) {
    %c0_i32 = arith.constant 0 : i32
    %c0_i32_0 = arith.constant 0 : i32
    return %arg0, %c0_i32 : i32, i32
  }
  func.func @transform_1(%arg0: i32, %arg1: i32) -> (i32, i32) {
    %c0_i32 = arith.constant 0 : i32
    %c0_i32_0 = arith.constant 0 : i32
    return %c0_i32, %arg1 : i32, i32
  }
  func.func @transform_2(%arg0: i32, %arg1: i32) -> (i32, i32) {
    %c0_i32 = arith.constant 0 : i32
    %c0_i32_0 = arith.constant 0 : i32
    return %c0_i32, %arg1 : i32, i32
  }
  func.func @transform_3(%arg0: i32, %arg1: i32) -> (i32, i32) {
    %c0_i32 = arith.constant 0 : i32
    return %arg0, %arg1 : i32, i32
  }
}

</mosaic_0001>

<bundles_post_ra>
// kernel: linear_forward.1
= control target key start
LH: loop header
LB: loop body
LE: loop exit
PB: predicated region body
PF: predicated region fallthrough
CT: control target
= control target key end

     0   :  { %8 = vsyncpa [#allocation3], 0  ;;  %s328_s0 = inlined_call_operand.vmem [shape: f32[8,128], index: 0, kind: input, shape index: {}]   ;;  %s329_s1 = inlined_call_operand.hbm [shape: f32[128,128], index: 1, kind: input, shape index: {}]   ;;  %s330_s2 = inlined_call_operand.vmem [shape: f32[1,128], index: 2, kind: input, shape index: {}]   ;;  %s331_s3 = inlined_call_operand.hbm [shape: f32[8,128], index: 3, kind: output, shape index: {}]  }
   0x1   :  { %9 = vsyncpa [#allocation4], 0  ;;  %s271_s12 = smov [#allocation2]   ;;  %s223_s16 = scalar_lea.hbm %s329_s1, 2048 }
   0x2   :  { %s17_s13 = sshll.u32 %s271_s12, 4  ;;  %p224_p0 = scmp.ne.s32.totalorder %s329_s1, %s223_s16  ;;  %s18_s13 = int_to_ptr.vmem [resolvable:$true] %s17_s13 }
   0x3   :  { %p227_p1 = scmp.lt.u32.totalorder %s223_s16, %s329_s1 }
   0x5   :  { %p229_p2 = pnand %p227_p1, %p224_p0 }
   0x7   :  { %232 = shalt.err (!%p229_p2)
}
   0x8   :  { %s233_s21 = scalar_lea.vmem %s18_s13, 2048  ;;  %p238_p4 = scmp.lt.s32.totalorder %s18_s13, %s18_s13 }
   0x9   :  { %p234_p3 = scmp.ne.s32.totalorder %s18_s13, %s233_s21  ;;  %p239_p5 = scmp.lt.s32.totalorder %s233_s21, %s233_s21 }
   0xb   :  { %p240_p6 = por %p239_p5, %p238_p4 }
   0xd   :  { %p241_p7 = pnand %p240_p6, %p234_p3 }
   0xf   :  { %244 = shalt.err (!%p241_p7)
}
  0x10   :  { %s272_s22 = smov 128   ;;  %s273_s23 = smov 8  }
  0x11   :  { %23 = dma.hbm_to_vmem [thread:$0]  %s329_s1, 2048, %s18_s13, [#allocation3], %s272_s22, %s272_s22, %s273_s23  }
  0x12   :  { %267 = dma.done.wait [#allocation3], 2048  }
  0x13   :  { %268 = vsyncadd [#allocation3], 4294965248  ;;  %v274_v0 = vmov 0.0|0.0   ;;  %vm275_vm0 = vmmov 0   ;;  %v276_v1 = vmov 0.0   ;;  %v30_v2 = vld [vmem:[#allocation2] sm:$0xff] }
  0x14   :  { %192 = vmatprep.subr.bf16.mxu0 %v274_v0  ;;  %189 = vmatprep.mubr.msk.f32.mxu0 %vm275_vm0, %v276_v1  ;;  %v31_v3 = vld [vmem:[#allocation2 + $0x8] sm:$0xff]  ;;  %v32_v4 = vld [vmem:[#allocation2 + $0x10] sm:$0xff]  ;;  %v33_v6 = vld [vmem:[#allocation2 + $0x18] sm:$0xff]  ;;  %s277_s29 = smov [#allocation5]  }
  0x15   :  { %v193_v5 = vpack.c.bf16 %v31_v3, %v30_v2  ;;  %v196_v7 = vpack.c.bf16 %v33_v6, %v32_v4  ;;  %v34_v8 = vld [vmem:[#allocation2 + $0x20] sm:$0xff]  ;;  %v35_v9 = vld [vmem:[#allocation2 + $0x28] sm:$0xff]  ;;  %v36_v11 = vld [vmem:[#allocation2 + $0x30] sm:$0xff]  ;;  %s130_s30 = sshll.u32 %s277_s29, 4  ;;  %s131_s30 = int_to_ptr.vmem [resolvable:$true] %s130_s30 }
  0x16   :  { %v199_v10 = vpack.c.bf16 %v35_v9, %v34_v8  ;;  %v37_v12 = vld [vmem:[#allocation2 + $0x38] sm:$0xff]  ;;  %v38_v14 = vld [vmem:[#allocation2 + $0x40] sm:$0xff]  ;;  %v39_v15 = vld [vmem:[#allocation2 + $0x48] sm:$0xff]  ;;  %s245_s4 = scalar_lea.vmem %s131_s30, 128  ;;  %p250_p9 = scmp.lt.s32.totalorder %s131_s30, %s131_s30 }
  0x17   :  { %194 = vmatpush3.bf16.msra.mxu0 %v193_v5  ;;  %v202_v13 = vpack.c.bf16 %v37_v12, %v36_v11  ;;  %v205_v16 = vpack.c.bf16 %v39_v15, %v38_v14  ;;  %v40_v17 = vld [vmem:[#allocation2 + $0x50] sm:$0xff]  ;;  %v41_v18 = vld [vmem:[#allocation2 + $0x58] sm:$0xff]  ;;  %v42_v20 = vld [vmem:[#allocation2 + $0x60] sm:$0xff]  ;;  %p246_p8 = scmp.ne.s32.totalorder %s131_s30, %s245_s4  ;;  %p251_p10 = scmp.lt.s32.totalorder %s245_s4, %s245_s4 }
  0x18   :  { %195 = vmatprep.subr.bf16.mxu0 %v274_v0  ;;  %v208_v19 = vpack.c.bf16 %v41_v18, %v40_v17  ;;  %v43_v21 = vld [vmem:[#allocation2 + $0x68] sm:$0xff]  ;;  %v44_v23 = vld [vmem:[#allocation2 + $0x70] sm:$0xff]  ;;  %v45_v24 = vld [vmem:[#allocation2 + $0x78] sm:$0xff] }
  0x19   :  { %v211_v22 = vpack.c.bf16 %v43_v21, %v42_v20  ;;  %v214_v25 = vpack.c.bf16 %v45_v24, %v44_v23  ;;  %v29_v26 = vld [vmem:[%s328_s0] sm:$0xff]  ;;  %p252_p11 = por %p251_p10, %p250_p9 }
  0x1a   :  { %v139_v27 = vld [vmem:[%s330_s2] ss:$0 sm:$0xff] }
  0x1b   :  { %197 = vmatpush3.bf16.msra.mxu0 %v196_v7  ;;  %p253_p12 = pnand %p252_p11, %p246_p8 }
  0x1c   :  { %198 = vmatprep.subr.bf16.mxu0 %v274_v0 }
  0x1f   :  { %200 = vmatpush3.bf16.msra.mxu0 %v199_v10 }
  0x20   :  { %201 = vmatprep.subr.bf16.mxu0 %v274_v0 }
  0x23   :  { %203 = vmatpush3.bf16.msra.mxu0 %v202_v13 }
  0x24   :  { %204 = vmatprep.subr.bf16.mxu0 %v274_v0 }
  0x27   :  { %206 = vmatpush3.bf16.msra.mxu0 %v205_v16 }
  0x28   :  { %207 = vmatprep.subr.bf16.mxu0 %v274_v0 }
  0x2b   :  { %209 = vmatpush3.bf16.msra.mxu0 %v208_v19 }
  0x2c   :  { %210 = vmatprep.subr.bf16.mxu0 %v274_v0 }
  0x2f   :  { %212 = vmatpush3.bf16.msra.mxu0 %v211_v22 }
  0x30   :  { %213 = vmatprep.subr.bf16.mxu0 %v274_v0 }
  0x33   :  { %215 = vmatpush3.bf16.msra.mxu0 %v214_v25 }
  0x36   :  { %190 = vmatmul.mubr.f32.vlgmr.msra.gmra.mrb[0].mxu0 %v29_v26 }
 0x109   :  { %v119_v28 = vpop.f32.mrb[0].mxu0 }
 0x10a   :  { %v120_v29 = vadd.f32 %v139_v27, %v119_v28  ;;  %v191_v30 = vpop.f32.mrb[1].mxu0 }
 0x10c   :  { %123 = vst [vmem:[#allocation5] sm:$0xff] %v120_v29 }
 0x10d   :  { %256 = shalt.err (!%p253_p12)
}
 0x10e   :  { %s257_s6 = scalar_lea.hbm %s331_s3, 128 }
 0x10f   :  { %p258_p13 = scmp.ne.s32.totalorder %s331_s3, %s257_s6  ;;  %p261_p0 = scmp.lt.u32.totalorder %s257_s6, %s331_s3 }
 0x111   :  { %p263_p1 = pnand %p261_p0, %p258_p13 }
 0x113   :  { %266 = shalt.err (!%p263_p1)
}
 0x114   :  { %133 = dma.vmem_to_hbm [thread:$0]  %s131_s30, 128, %s331_s3, [#allocation4]  }
 0x115   :  { %269 = dma.done.wait [#allocation4], 128  }
 0x116   :  { %270 = vsyncadd [#allocation4], 4294967168 }
 0x117   :  { %137 = vsyncpa [#allocation3], 1 }
 0x118   :  { %138 = vsyncpa [#allocation4], 1 }

</bundles_post_ra>
